<compile_context>
chip_gen: v6e
topology: v6e:2x2x1
jax: 0.10.0
libtpu: 0.0.40
codegen_flags: <defaults>
</compile_context>

<pallas_src>
import functools

import jax
import jax.numpy as jnp
from jax.experimental import pallas as pl
from jax.experimental.pallas import tpu as pltpu


def _round_up(x, m):
    return (x + m - 1) // m * m


def _convlstm_kernel(patch_ref, w_ref, b_ref, c_ref, h_out_ref, c_out_ref, *, CH):
    """One lane-block per grid step (default: the whole problem in one step).

    patch_ref : (K_pad, L)   bf16  im2col patches; rows (kh, kw, c), lanes (b, y, x)
    w_ref     : (4*CH, K_pad) bf16 conv weight in matching row order
    b_ref     : (4*CH, 1)    f32   conv bias (sublane-resident, lane-broadcast)
    c_ref     : (CH, L)            current cell state
    h_out_ref : (CH, L)
    c_out_ref : (CH, L)
    """
    # Single MXU matmul, f32 accumulation; result stays register resident.
    z = jnp.dot(w_ref[...], patch_ref[...], preferred_element_type=jnp.float32)
    z = z + b_ref[...]                       # (4*CH, 1) broadcast along lanes

    # Gate order [i, f, o, g]; the three sigmoids fused into one EUP call.
    # Every slice is a whole sublane block (CH = multiple of 8).
    ifo = jax.nn.sigmoid(z[: 3 * CH, :])
    i = ifo[0 * CH: 1 * CH, :]
    f = ifo[1 * CH: 2 * CH, :]
    o = ifo[2 * CH: 3 * CH, :]
    g = jnp.tanh(z[3 * CH: 4 * CH, :])

    c_cur = c_ref[...].astype(jnp.float32)
    c_next = f * c_cur + i * g
    h_next = o * jnp.tanh(c_next)

    c_out_ref[...] = c_next.astype(c_out_ref.dtype)
    h_out_ref[...] = h_next.astype(h_out_ref.dtype)


def conv_lstm_cell(x_nchw, h_nchw, c_nchw, weight_oihw, bias, *, num_lane_blocks=1):
    """ConvLSTMCell.forward: inputs/outputs in PyTorch NCHW convention.

    num_lane_blocks: 1 on v5e/v6e (single TC -> single grid step),
                     2 on v7x to feed both TensorCores ("parallel" axis).
    """
    B, Cin, H, W = x_nchw.shape
    CH = h_nchw.shape[1]
    O, CT, KH, KW = weight_oihw.shape
    assert O == 4 * CH and CT == Cin + CH
    assert KH % 2 == 1 and KW % 2 == 1, "symmetric 'same' padding needs odd kernel"
    assert CH % 8 == 0, "CH multiple of 8 keeps gate slices sublane-aligned"
    ph, pw = KH // 2, KW // 2
    HW = H * W
    L = B * HW                          # batch folded into the lane axis
    K2CT = KH * KW * CT
    K_pad = _round_up(K2CT, 128)        # aligned contraction dim
    L_pad = _round_up(L, 128)           # lane-dense (unmasked) stores
    assert L_pad % (128 * num_lane_blocks) == 0
    L_blk = L_pad // num_lane_blocks

    # --- wrapper glue: layout plumbing only (concat/pad/im2col/reshape/cast),
    #     fused by XLA under jit.  See header note (#4) for the in-kernel
    #     im2col path at production sizes. ------------------------------------
    comb = jnp.concatenate([x_nchw, h_nchw], axis=1)                # (B, CT, H, W)
    comb = jnp.pad(comb, ((0, 0), (0, 0), (ph, ph), (pw, pw)))
    comb = jnp.transpose(comb, (1, 0, 2, 3))                        # (CT, B, Hp, Wp)
    # im2col: rows ordered (kh, kw, c), lanes ordered (b, y, x).
    patches = jnp.stack(
        [comb[:, :, kh:kh + H, kw:kw + W] for kh in range(KH) for kw in range(KW)],
        axis=0).reshape(K2CT, L)
    patches = jnp.pad(
        patches, ((0, K_pad - K2CT), (0, L_pad - L))).astype(jnp.bfloat16)
    w_mat = jnp.transpose(weight_oihw, (0, 2, 3, 1)).reshape(4 * CH, K2CT)
    w_mat = jnp.pad(w_mat, ((0, 0), (0, K_pad - K2CT))).astype(jnp.bfloat16)
    b_col = bias.reshape(4 * CH, 1).astype(jnp.float32)
    c_flat = jnp.transpose(c_nchw, (1, 0, 2, 3)).reshape(CH, L)
    c_flat = jnp.pad(c_flat, ((0, 0), (0, L_pad - L)))

    kernel = functools.partial(_convlstm_kernel, CH=CH)

    # Accurate cost hint: keeps XLA from conservatively serializing the
    # surrounding wrapper ops around this tiny custom call.
    flops = 2 * (4 * CH) * K_pad * L_pad
    transcendentals = 5 * CH * L_pad                 # 3 sigmoid + 2 tanh per pixel
    bytes_accessed = (K_pad * L_pad * 2              # patches (bf16)
                      + 4 * CH * K_pad * 2           # weights (bf16)
                      + 4 * CH * 4                   # bias
                      + 3 * CH * L_pad * 4)          # c in + h/c out (f32)

    h_flat, c_next_flat = pl.pallas_call(
        kernel,
        out_shape=(
            jax.ShapeDtypeStruct((CH, L_pad), x_nchw.dtype),
            jax.ShapeDtypeStruct((CH, L_pad), x_nchw.dtype),
        ),
        grid_spec=pltpu.PrefetchScalarGridSpec(
            num_scalar_prefetch=0,
            grid=(num_lane_blocks,),
            in_specs=[
                pl.BlockSpec((K_pad, L_blk), lambda j: (0, j)),
                pl.BlockSpec((4 * CH, K_pad), lambda j: (0, 0)),   # grid-invariant
                pl.BlockSpec((4 * CH, 1), lambda j: (0, 0)),       # grid-invariant
                pl.BlockSpec((CH, L_blk), lambda j: (0, j)),
            ],
            out_specs=[
                pl.BlockSpec((CH, L_blk), lambda j: (0, j)),
                pl.BlockSpec((CH, L_blk), lambda j: (0, j)),
            ],
        ),
        compiler_params=pltpu.CompilerParams(
            dimension_semantics=("parallel",)),
        cost_estimate=pl.CostEstimate(
            flops=flops, transcendentals=transcendentals,
            bytes_accessed=bytes_accessed),
    )(patches, w_mat, b_col, c_flat)

    h_next = jnp.transpose(h_flat[:, :L].reshape(CH, B, H, W), (1, 0, 2, 3))
    c_next = jnp.transpose(c_next_flat[:, :L].reshape(CH, B, H, W), (1, 0, 2, 3))
    return h_next, c_next


def conv_lstm_cell_ref(x, h, c, weight, bias):
    """Pure-JAX reference mirroring the PyTorch forward (NCHW, f32)."""
    combined = jnp.concatenate([x, h], axis=1)
    cc = jax.lax.conv_general_dilated(
        combined, weight, window_strides=(1, 1),
        padding=((weight.shape[2] // 2,) * 2, (weight.shape[3] // 2,) * 2),
        dimension_numbers=("NCHW", "OIHW", "NCHW"))
    cc = cc + bias[None, :, None, None]
    cc_i, cc_f, cc_o, cc_g = jnp.split(cc, 4, axis=1)
    i = jax.nn.sigmoid(cc_i)
    f = jax.nn.sigmoid(cc_f)
    o = jax.nn.sigmoid(cc_o)
    g = jnp.tanh(cc_g)
    c_next = f * c + i * g
    h_next = o * jnp.tanh(c_next)
    return h_next, c_next


if __name__ == "__main__":
    # Shapes consistent with the module: batch=2, input_dim=4, hidden_dim=8,
    # 16x16 spatial, 3x3 kernel, bias=True.
    B, Cin, CH, H, W = 2, 4, 8, 16, 16
    KH, KW = 3, 3
    CT = Cin + CH

    key = jax.random.PRNGKey(0)
    kx, kh, kc, kw_, kb = jax.random.split(key, 5)
    x = jax.random.normal(kx, (B, Cin, H, W), dtype=jnp.float32)
    h0 = jax.random.normal(kh, (B, CH, H, W), dtype=jnp.float32)
    c0 = jax.random.normal(kc, (B, CH, H, W), dtype=jnp.float32)
    # Deterministic synthetic parameters (Conv2d(in=CT, out=4*CH, k=3, bias=True)).
    scale = 1.0 / jnp.sqrt(CT * KH * KW)
    weight = jax.random.uniform(kw_, (4 * CH, CT, KH, KW),
                                minval=-scale, maxval=scale, dtype=jnp.float32)
    bias = jax.random.uniform(kb, (4 * CH,),
                              minval=-scale, maxval=scale, dtype=jnp.float32)

    cell = jax.jit(conv_lstm_cell)
    h_next, c_next = cell(x, h0, c0, weight, bias)
    jax.block_until_ready((h_next, c_next))

    h_ref, c_ref = conv_lstm_cell_ref(x, h0, c0, weight, bias)
    # Tolerance reflects bf16 matmul operands (f32 accumulation / gate math).
    assert jnp.allclose(h_next, h_ref, atol=2e-2, rtol=2e-2), "h_next mismatch"
    assert jnp.allclose(c_next, c_ref, atol=2e-2, rtol=2e-2), "c_next mismatch"

    print("KERNEL_OK")
</pallas_src>

<mosaic_0001>
module attributes {stable_mosaic.version = 11 : i64} {
  func.func @_convlstm_kernel(%arg0: i32, %arg1: memref<128x512xbf16, #tpu.memory_space<vmem>>, %arg2: memref<32x128xbf16, #tpu.memory_space<vmem>>, %arg3: memref<32x1xf32, #tpu.memory_space<vmem>>, %arg4: memref<8x512xf32, #tpu.memory_space<vmem>>, %arg5: memref<8x512xf32, #tpu.memory_space<vmem>>, %arg6: memref<8x512xf32, #tpu.memory_space<vmem>>) attributes {dimension_semantics = [#tpu.dimension_semantics<parallel>], iteration_bounds = array<i64: 1>, scalar_prefetch = 0 : i64, scratch_operands = 0 : i64, tpu.core_type = #tpu.core_type<tc>, window_params = [{transform_indices = @transform_0, window_bounds = array<i64: 128, 512>}, {pipeline_mode = #tpu.pipeline_mode<synchronous>, transform_indices = @transform_1, window_bounds = array<i64: 32, 128>}, {pipeline_mode = #tpu.pipeline_mode<synchronous>, transform_indices = @transform_2, window_bounds = array<i64: 32, 1>}, {transform_indices = @transform_3, window_bounds = array<i64: 8, 512>}, {transform_indices = @transform_4, window_bounds = array<i64: 8, 512>}, {transform_indices = @transform_5, window_bounds = array<i64: 8, 512>}]} {
    %c0 = arith.constant 0 : index
    %c0_0 = arith.constant 0 : index
    %0 = vector.load %arg2[%c0, %c0_0] : memref<32x128xbf16, #tpu.memory_space<vmem>>, vector<32x128xbf16>
    %c0_1 = arith.constant 0 : index
    %c0_2 = arith.constant 0 : index
    %1 = vector.load %arg1[%c0_1, %c0_2] : memref<128x512xbf16, #tpu.memory_space<vmem>>, vector<128x512xbf16>
    %cst = arith.constant dense<0.000000e+00> : vector<32x512xf32>
    %2 = tpu.matmul %0, %1, %cst {dimension_numbers = #tpu.dot_dimension_numbers<[1], [0], [0], [1], [0, 0, 1, 1], [], []>} : vector<32x128xbf16>, vector<128x512xbf16>, vector<32x512xf32> -> vector<32x512xf32>
    %c0_3 = arith.constant 0 : index
    %c0_4 = arith.constant 0 : index
    %3 = vector.load %arg3[%c0_3, %c0_4] : memref<32x1xf32, #tpu.memory_space<vmem>>, vector<32x1xf32>
    %4 = vector.broadcast %3 : vector<32x1xf32> to vector<32x512xf32>
    %5 = arith.addf %2, %4 : vector<32x512xf32>
    %6 = vector.extract_strided_slice %5 {offsets = [0, 0], sizes = [24, 512], strides = [1, 1]} : vector<32x512xf32> to vector<24x512xf32>
    %7 = arith.negf %6 : vector<24x512xf32>
    %8 = math.exp %7 : vector<24x512xf32>
    %cst_5 = arith.constant 1.000000e+00 : f32
    %9 = vector.broadcast %cst_5 : f32 to vector<24x512xf32>
    %10 = arith.addf %9, %8 : vector<24x512xf32>
    %11 = arith.divf %9, %10 : vector<24x512xf32>
    %12 = vector.extract_strided_slice %11 {offsets = [0, 0], sizes = [8, 512], strides = [1, 1]} : vector<24x512xf32> to vector<8x512xf32>
    %13 = vector.extract_strided_slice %11 {offsets = [8, 0], sizes = [8, 512], strides = [1, 1]} : vector<24x512xf32> to vector<8x512xf32>
    %14 = vector.extract_strided_slice %11 {offsets = [16, 0], sizes = [8, 512], strides = [1, 1]} : vector<24x512xf32> to vector<8x512xf32>
    %15 = vector.extract_strided_slice %5 {offsets = [24, 0], sizes = [8, 512], strides = [1, 1]} : vector<32x512xf32> to vector<8x512xf32>
    %16 = math.tanh %15 : vector<8x512xf32>
    %c0_6 = arith.constant 0 : index
    %c0_7 = arith.constant 0 : index
    %17 = vector.load %arg4[%c0_6, %c0_7] : memref<8x512xf32, #tpu.memory_space<vmem>>, vector<8x512xf32>
    %18 = arith.mulf %13, %17 : vector<8x512xf32>
    %19 = arith.mulf %12, %16 : vector<8x512xf32>
    %20 = arith.addf %18, %19 : vector<8x512xf32>
    %21 = math.tanh %20 : vector<8x512xf32>
    %22 = arith.mulf %14, %21 : vector<8x512xf32>
    %c0_8 = arith.constant 0 : index
    %c0_9 = arith.constant 0 : index
    %23 = vector.load %arg6[%c0_8, %c0_9] : memref<8x512xf32, #tpu.memory_space<vmem>>, vector<8x512xf32>
    tpu.vector_store %arg6[%c0_8, %c0_9], %20 {strides = array<i32>} : memref<8x512xf32, #tpu.memory_space<vmem>>, vector<8x512xf32>,
    %c0_10 = arith.constant 0 : index
    %c0_11 = arith.constant 0 : index
    %24 = vector.load %arg5[%c0_10, %c0_11] : memref<8x512xf32, #tpu.memory_space<vmem>>, vector<8x512xf32>
    tpu.vector_store %arg5[%c0_10, %c0_11], %22 {strides = array<i32>} : memref<8x512xf32, #tpu.memory_space<vmem>>, vector<8x512xf32>,
    return
  }
  func.func @transform_0(%arg0: i32) -> (i32, i32) {
    %c0_i32 = arith.constant 0 : i32
    %c0_i32_0 = arith.constant 0 : i32
    return %c0_i32, %arg0 : i32, i32
  }
  func.func @transform_1(%arg0: i32) -> (i32, i32) {
    %c0_i32 = arith.constant 0 : i32
    %c0_i32_0 = arith.constant 0 : i32
    %c0_i32_1 = arith.constant 0 : i32
    return %c0_i32, %c0_i32_0 : i32, i32
  }
  func.func @transform_2(%arg0: i32) -> (i32, i32) {
    %c0_i32 = arith.constant 0 : i32
    %c0_i32_0 = arith.constant 0 : i32
    %c0_i32_1 = arith.constant 0 : i32
    return %c0_i32, %c0_i32_0 : i32, i32
  }
  func.func @transform_3(%arg0: i32) -> (i32, i32) {
    %c0_i32 = arith.constant 0 : i32
    %c0_i32_0 = arith.constant 0 : i32
    return %c0_i32, %arg0 : i32, i32
  }
  func.func @transform_4(%arg0: i32) -> (i32, i32) {
    %c0_i32 = arith.constant 0 : i32
    %c0_i32_0 = arith.constant 0 : i32
    return %c0_i32, %arg0 : i32, i32
  }
  func.func @transform_5(%arg0: i32) -> (i32, i32) {
    %c0_i32 = arith.constant 0 : i32
    %c0_i32_0 = arith.constant 0 : i32
    return %c0_i32, %arg0 : i32, i32
  }
}

</mosaic_0001>

<bundles_post_ra>
// kernel: conv_lstm_cell.1
= control target key start
LH: loop header
LB: loop body
LE: loop exit
PB: predicated region body
PF: predicated region fallthrough
CT: control target
= control target key end

     0   :  { %v637_v1 = vmov 0   ;;  %s824_s0 = inlined_call_operand.vmem [shape: bf16[128,512], index: 0, kind: input, shape index: {}]   ;;  %s825_s1 = inlined_call_operand.vmem [shape: bf16[32,128], index: 1, kind: input, shape index: {}]   ;;  %s826_s2 = inlined_call_operand.vmem [shape: f32[32,1], index: 2, kind: input, shape index: {}]   ;;  %s827_s3 = inlined_call_operand.vmem [shape: f32[8,512], index: 3, kind: input, shape index: {}]   ;;  %s828_s5 = inlined_call_operand.vmem [shape: f32[8,512], index: 5, kind: output, shape index: {1}]   ;;  %s829_s4 = inlined_call_operand.vmem [shape: f32[8,512], index: 4, kind: output, shape index: {0}]  }
   0x1   :  { %v523_v0 = vld [vmem:[%s824_s0 + $0xe4] ss:$16 sps:$4 sm:$0xff]   ;;  %284 = vmatprep.mubr.bf16.mxu0 %v637_v1  ;;  %337 = vmatprep.mubr.bf16.mxu1 %v637_v1  ;;  %v525_v2 = vld [vmem:[%s824_s0 + $0xec] ss:$16 sps:$4 sm:$0xff]   ;;  %v527_v3 = vld [vmem:[%s824_s0 + $0xe0] ss:$16 sps:$4 sm:$0xff]  }
   0x2   :  { %521 = vset.pattern.permute.xlu0 %v637_v1  ;;  %522 = vset.pattern.permute.xlu1 %v637_v1  ;;  %v528_v4 = vld [vmem:[%s824_s0 + $0xe8] ss:$16 sps:$4 sm:$0xff]   ;;  %v529_v5 = vld [vmem:[%s824_s0 + $0xc4] ss:$16 sps:$4 sm:$0xff]   ;;  %v531_v6 = vld [vmem:[%s824_s0 + $0xcc] ss:$16 sps:$4 sm:$0xff]  }
   0x3   :  { %252 = vmatprep.subr.bf16.mxu0 %v523_v0  ;;  %305 = vmatprep.subr.bf16.mxu1 %v525_v2  ;;  %v533_v7 = vld [vmem:[%s824_s0 + $0xc0] ss:$16 sps:$4 sm:$0xff]   ;;  %v534_v8 = vld [vmem:[%s824_s0 + $0xc8] ss:$16 sps:$4 sm:$0xff]   ;;  %v535_v9 = vld [vmem:[%s824_s0 + $0xa4] ss:$16 sps:$4 sm:$0xff]  }
   0x4   :  { %253 = vmatpush1.bf16.msra.mxu0 %v527_v3  ;;  %306 = vmatpush1.bf16.msra.mxu1 %v528_v4  ;;  %v537_v10 = vld [vmem:[%s824_s0 + $0xac] ss:$16 sps:$4 sm:$0xff]   ;;  %v539_v11 = vld [vmem:[%s824_s0 + $0xa0] ss:$16 sps:$4 sm:$0xff]   ;;  %v540_v12 = vld [vmem:[%s824_s0 + $0xa8] ss:$16 sps:$4 sm:$0xff]  }
   0x5   :  { %254 = vmatprep.subr.bf16.mxu0 %v529_v5  ;;  %307 = vmatprep.subr.bf16.mxu1 %v531_v6  ;;  %v541_v13 = vld [vmem:[%s824_s0 + $0x84] ss:$16 sps:$4 sm:$0xff]   ;;  %v543_v14 = vld [vmem:[%s824_s0 + $0x8c] ss:$16 sps:$4 sm:$0xff]   ;;  %v545_v15 = vld [vmem:[%s824_s0 + $0x80] ss:$16 sps:$4 sm:$0xff]  }
   0x6   :  { %v546_v16 = vld [vmem:[%s824_s0 + $0x88] ss:$16 sps:$4 sm:$0xff]   ;;  %v547_v17 = vld [vmem:[%s824_s0 + $0x64] ss:$16 sps:$4 sm:$0xff]   ;;  %v549_v18 = vld [vmem:[%s824_s0 + $0x6c] ss:$16 sps:$4 sm:$0xff]  }
   0x7   :  { %v551_v19 = vld [vmem:[%s824_s0 + $0x60] ss:$16 sps:$4 sm:$0xff]   ;;  %v552_v20 = vld [vmem:[%s824_s0 + $0x68] ss:$16 sps:$4 sm:$0xff]   ;;  %v553_v21 = vld [vmem:[%s824_s0 + $0x44] ss:$16 sps:$4 sm:$0xff]  }
   0x8   :  { %255 = vmatpush1.bf16.msra.mxu0 %v533_v7  ;;  %308 = vmatpush1.bf16.msra.mxu1 %v534_v8  ;;  %v555_v22 = vld [vmem:[%s824_s0 + $0x4c] ss:$16 sps:$4 sm:$0xff]   ;;  %v557_v23 = vld [vmem:[%s824_s0 + $0x40] ss:$16 sps:$4 sm:$0xff]   ;;  %v558_v24 = vld [vmem:[%s824_s0 + $0x48] ss:$16 sps:$4 sm:$0xff]  }
   0x9   :  { %256 = vmatprep.subr.bf16.mxu0 %v535_v9  ;;  %309 = vmatprep.subr.bf16.mxu1 %v537_v10  ;;  %v559_v25 = vld [vmem:[%s824_s0 + $0x24] ss:$16 sps:$4 sm:$0xff]   ;;  %v561_v26 = vld [vmem:[%s824_s0 + $0x2c] ss:$16 sps:$4 sm:$0xff]   ;;  %v563_v28 = vld [vmem:[%s824_s0 + $0x20] ss:$16 sps:$4 sm:$0xff]  }
   0xa   :  { %v56_v27 = vld [vmem:[%s826_s2] sm:$0xff]  ;;  %v564_v29 = vld [vmem:[%s824_s0 + $0x28] ss:$16 sps:$4 sm:$0xff]   ;;  %v58_v30 = vld [vmem:[%s826_s2 + $0x10] sm:$0xff] }
   0xb   :  { %v565_v31 = vld [vmem:[%s824_s0 + $0x4] ss:$16 sps:$4 sm:$0xff]   ;;  %v567_v32 = vld [vmem:[%s824_s0 + $0xc] ss:$16 sps:$4 sm:$0xff]   ;;  %62 = vperm.xlu0 %521, %v56_v27   ;;  %72 = vperm.xlu1 %522, %v58_v30   ;;  %v569_v35 = vld [vmem:[%s824_s0] ss:$16 sps:$4 sm:$0xff]  }
   0xc   :  { %257 = vmatpush1.bf16.msra.mxu0 %v539_v11  ;;  %310 = vmatpush1.bf16.msra.mxu1 %v540_v12  ;;  %v57_v33 = vld [vmem:[%s826_s2 + $0x8] sm:$0xff]  ;;  %v59_v34 = vld [vmem:[%s826_s2 + $0x18] sm:$0xff]  ;;  %v571_v37 = vld [vmem:[%s825_s1] sm:$0xff]  }
   0xd   :  { %258 = vmatprep.subr.bf16.mxu0 %v541_v13  ;;  %311 = vmatprep.subr.bf16.mxu1 %v543_v14  ;;  %v570_v36 = vld [vmem:[%s824_s0 + $0x8] ss:$16 sps:$4 sm:$0xff]  }
   0xe   :  { %v572_v38 = vld [vmem:[%s825_s1 + $0x8] sm:$0xff]  }
   0xf   :  { %67 = vperm.xlu0 %521, %v57_v33   ;;  %77 = vperm.xlu1 %522, %v59_v34  }
  0x10   :  { %259 = vmatpush1.bf16.msra.mxu0 %v545_v15  ;;  %312 = vmatpush1.bf16.msra.mxu1 %v546_v16 }
  0x11   :  { %260 = vmatprep.subr.bf16.mxu0 %v547_v17  ;;  %313 = vmatprep.subr.bf16.mxu1 %v549_v18 }
  0x14   :  { %261 = vmatpush1.bf16.msra.mxu0 %v551_v19  ;;  %314 = vmatpush1.bf16.msra.mxu1 %v552_v20 }
  0x15   :  { %262 = vmatprep.subr.bf16.mxu0 %v553_v21  ;;  %315 = vmatprep.subr.bf16.mxu1 %v555_v22 }
  0x18   :  { %263 = vmatpush1.bf16.msra.mxu0 %v557_v23  ;;  %316 = vmatpush1.bf16.msra.mxu1 %v558_v24 }
  0x19   :  { %264 = vmatprep.subr.bf16.mxu0 %v559_v25  ;;  %317 = vmatprep.subr.bf16.mxu1 %v561_v26 }
  0x1c   :  { %265 = vmatpush1.bf16.msra.mxu0 %v563_v28  ;;  %318 = vmatpush1.bf16.msra.mxu1 %v564_v29 }
  0x1d   :  { %266 = vmatprep.subr.bf16.mxu0 %v565_v31  ;;  %319 = vmatprep.subr.bf16.mxu1 %v567_v32 }
  0x20   :  { %267 = vmatpush1.bf16.msra.mxu0 %v569_v35  ;;  %320 = vmatpush1.bf16.msra.mxu1 %v570_v36 }
  0x23   :  { %285 = vmatmul.mubr.bf16.vlgmr.msra.gmra.mxu0 %v571_v37  ;;  %338 = vmatmul.mubr.bf16.vlgmr.msra.gmra.mxu1 %v571_v37 }
  0x24   :  { %294 = vmatprep.mubr.bf16.mxu0 %v637_v1  ;;  %347 = vmatprep.mubr.bf16.mxu1 %v637_v1 }
  0x2b   :  { %295 = vmatmul.mubr.bf16.gmra.mxu0 %v572_v38  ;;  %348 = vmatmul.mubr.bf16.gmra.mxu1 %v572_v38 }
  0x86   :  { %v63_v39 = vpop.permute.xlu0 %62  ;;  %v73_v51 = vpop.permute.xlu1 %72 }
  0x8a   :  { %v68_v48 = vpop.permute.xlu0 %67  ;;  %v78_v5 = vpop.permute.xlu1 %77 }
  0xe3   :  { %v286_v40 = vpop.f32.mrf.mxu0  ;;  %v339_v41 = vpop.f32.mrf.mxu1 }
  0xe4   :  { %v287_v42 = vadd.f32 %v286_v40, %v63_v39  ;;  %v340_v43 = vadd.f32 %v339_v41, %v63_v39 }
  0xe5   :  { %v288_v44 = vpop.f32.mrf.mxu0  ;;  %v341_v45 = vpop.f32.mrf.mxu1 }
  0xe6   :  { %v508_v46 = vmul.f32 -1.442695, %v287_v42  ;;  %v510_v47 = vmul.f32 -1.442695, %v340_v43  ;;  %v289_v49 = vadd.f32 %v288_v44, %v63_v39  ;;  %v342_v50 = vadd.f32 %v341_v45, %v63_v39 }
  0xe7   :  { %v290_v52 = vpop.f32.mrf.mxu0  ;;  %v343_v53 = vpop.f32.mrf.mxu1 }
  0xe8   :  { %573 = vpow2.f32 %v508_v46  ;;  %v509_v54 = vmul.f32 -1.442695, %v289_v49  ;;  %v511_v55 = vmul.f32 -1.442695, %v342_v50  ;;  %v291_v56 = vadd.f32 %v290_v52, %v68_v48 }
  0xe9   :  { %575 = vpow2.f32 %v510_v47  ;;  %v344_v57 = vadd.f32 %v343_v53, %v68_v48  ;;  %v292_v58 = vpop.f32.mrf.mxu0  ;;  %v345_v59 = vpop.f32.mrf.mxu1 }
  0xea   :  { %577 = vpow2.f32 %v509_v54  ;;  %v512_v60 = vmul.f32 -1.442695, %v291_v56  ;;  %v293_v61 = vadd.f32 %v292_v58, %v68_v48  ;;  %v346_v62 = vadd.f32 %v345_v59, %v68_v48  ;;  %v436_v54 = vld [vmem:[%s827_s3 + $0x10] sm:$0xff]  ;;  %v435_v58 = vld [vmem:[%s827_s3 + $0x8] sm:$0xff] }
  0xeb   :  { %579 = vpow2.f32 %v511_v55  ;;  %v514_v63 = vmul.f32 -1.442695, %v344_v57  ;;  %v296_v0 = vpop.f32.mrf.mxu0  ;;  %v349_v1 = vpop.f32.mrf.mxu1 }
  0xec   :  { %581 = vpow2.f32 %v512_v60  ;;  %v513_v2 = vmul.f32 -1.442695, %v293_v61  ;;  %v515_v3 = vmul.f32 -1.442695, %v346_v62  ;;  %v297_v4 = vadd.f32 %v296_v0, %v73_v51  ;;  %v437_v62 = vld [vmem:[%s827_s3 + $0x18] sm:$0xff] }
  0xed   :  { %583 = vpow2.f32 %v514_v63  ;;  %v350_v6 = vadd.f32 %v349_v1, %v73_v51  ;;  %v298_v7 = vpop.f32.mrf.mxu0  ;;  %v351_v8 = vpop.f32.mrf.mxu1 }
  0xee   :  { %585 = vpow2.f32 %v513_v2  ;;  %v516_v9 = vmul.f32 -1.442695, %v297_v4  ;;  %v299_v10 = vadd.f32 %v298_v7, %v73_v51  ;;  %v352_v11 = vadd.f32 %v351_v8, %v73_v51  ;;  %v434_v51 = vld [vmem:[%s827_s3] sm:$0xff] }
  0xef   :  { %587 = vpow2.f32 %v515_v3  ;;  %v518_v12 = vmul.f32 -1.442695, %v350_v6  ;;  %v300_v13 = vpop.f32.mrf.mxu0  ;;  %v353_v14 = vpop.f32.mrf.mxu1 }
  0xf0   :  { %589 = vpow2.f32 %v516_v9  ;;  %v517_v15 = vmul.f32 -1.442695, %v299_v10  ;;  %v519_v16 = vmul.f32 -1.442695, %v352_v11  ;;  %v301_v17 = vadd.f32 %v300_v13, %v78_v5 }
  0xf1   :  { %591 = vpow2.f32 %v518_v12  ;;  %v354_v18 = vadd.f32 %v353_v14, %v78_v5  ;;  %v302_v19 = vpop.f32.mrf.mxu0  ;;  %v355_v20 = vpop.f32.mrf.mxu1 }
  0xf2   :  { %593 = vpow2.f32 %v517_v15  ;;  %v303_v21 = vadd.f32 %v302_v19, %v78_v5  ;;  %v356_v22 = vadd.f32 %v355_v20, %v78_v5 }
  0xf3   :  { %595 = vpow2.f32 %v519_v16 }
  0xf4   :  { %597 = vtanh.f32 %v301_v17 }
  0xf5   :  { %v574_v23 = vpop.eup %573  ;;  %599 = vtanh.f32 %v354_v18 }
  0xf6   :  { %v576_v24 = vpop.eup %575  ;;  %v394_v25 = vadd.f32 1.0, %v574_v23  ;;  %601 = vtanh.f32 %v303_v21 }
  0xf7   :  { %v578_v26 = vpop.eup %577  ;;  %v396_v27 = vadd.f32 1.0, %v576_v24  ;;  %603 = vtanh.f32 %v356_v22 }
  0xf8   :  { %v580_v28 = vpop.eup %579  ;;  %605 = vrcp.f32 %v394_v25  ;;  %v395_v29 = vadd.f32 1.0, %v578_v26 }
  0xf9   :  { %v582_v30 = vpop.eup %581  ;;  %607 = vrcp.f32 %v396_v27  ;;  %v397_v31 = vadd.f32 1.0, %v580_v28 }
  0xfa   :  { %v584_v32 = vpop.eup %583  ;;  %609 = vrcp.f32 %v395_v29  ;;  %v398_v33 = vadd.f32 1.0, %v582_v30 }
  0xfb   :  { %v586_v34 = vpop.eup %585  ;;  %611 = vrcp.f32 %v397_v31  ;;  %v400_v35 = vadd.f32 1.0, %v584_v32 }
  0xfc   :  { %v588_v36 = vpop.eup %587  ;;  %613 = vrcp.f32 %v398_v33  ;;  %v399_v37 = vadd.f32 1.0, %v586_v34 }
  0xfd   :  { %v590_v38 = vpop.eup %589  ;;  %615 = vrcp.f32 %v400_v35  ;;  %v401_v39 = vadd.f32 1.0, %v588_v36 }
  0xfe   :  { %v592_v40 = vpop.eup %591  ;;  %617 = vrcp.f32 %v399_v37  ;;  %v402_v49 = vadd.f32 1.0, %v590_v38 }
  0xff   :  { %v594_v41 = vpop.eup %593  ;;  %619 = vrcp.f32 %v401_v39  ;;  %v404_v52 = vadd.f32 1.0, %v592_v40 }
 0x100   :  { %v596_v42 = vpop.eup %595  ;;  %v403_v55 = vadd.f32 1.0, %v594_v41  ;;  %621 = vrcp.f32 %v402_v49 }
 0x101   :  { %v598_v43 = vpop.eup %597  ;;  %v405_v57 = vadd.f32 1.0, %v596_v42  ;;  %623 = vrcp.f32 %v404_v52 }
 0x102   :  { %v600_v44 = vpop.eup %599  ;;  %625 = vrcp.f32 %v403_v55 }
 0x103   :  { %v602_v45 = vpop.eup %601  ;;  %627 = vrcp.f32 %v405_v57 }
 0x104   :  { %v604_v46 = vpop.eup %603 }
 0x105   :  { %v606_v47 = vpop.eup %605 }
 0x106   :  { %v608_v48 = vpop.eup %607  ;;  %v442_v61 = vmul.f32 %v606_v47, %v598_v43 }
 0x107   :  { %v610_v50 = vpop.eup %609  ;;  %v444_v1 = vmul.f32 %v608_v48, %v600_v44 }
 0x108   :  { %v612_v53 = vpop.eup %611  ;;  %v443_v5 = vmul.f32 %v610_v50, %v602_v45 }
 0x109   :  { %v614_v56 = vpop.eup %613  ;;  %v445_v8 = vmul.f32 %v612_v53, %v604_v46 }
 0x10a   :  { %v616_v59 = vpop.eup %615  ;;  %v438_v60 = vmul.f32 %v614_v56, %v434_v51 }
 0x10b   :  { %v618_v63 = vpop.eup %617  ;;  %v440_v0 = vmul.f32 %v616_v59, %v436_v54 }
 0x10c   :  { %v620_v2 = vpop.eup %619  ;;  %v446_v3 = vadd.f32 %v442_v61, %v438_v60  ;;  %v439_v4 = vmul.f32 %v618_v63, %v435_v58 }
 0x10d   :  { %v448_v6 = vadd.f32 %v444_v1, %v440_v0  ;;  %v441_v7 = vmul.f32 %v620_v2, %v437_v62  ;;  %v622_v11 = vpop.eup %621 }
 0x10e   :  { %629 = vtanh.f32 %v446_v3  ;;  %458 = vst [vmem:[%s828_s5] sm:$0xff] %v446_v3  ;;  %v447_v9 = vadd.f32 %v443_v5, %v439_v4  ;;  %v624_v12 = vpop.eup %623 }
 0x10f   :  { %631 = vtanh.f32 %v448_v6  ;;  %460 = vst [vmem:[%s828_s5 + $0x10] sm:$0xff] %v448_v6  ;;  %v449_v10 = vadd.f32 %v445_v8, %v441_v7  ;;  %v626_v13 = vpop.eup %625 }
 0x110   :  { %633 = vtanh.f32 %v447_v9  ;;  %459 = vst [vmem:[%s828_s5 + $0x8] sm:$0xff] %v447_v9  ;;  %v628_v14 = vpop.eup %627 }
 0x111   :  { %635 = vtanh.f32 %v449_v10  ;;  %461 = vst [vmem:[%s828_s5 + $0x18] sm:$0xff] %v449_v10 }
 0x11b   :  { %v630_v15 = vpop.eup %629 }
 0x11c   :  { %v632_v16 = vpop.eup %631  ;;  %v454_v17 = vmul.f32 %v630_v15, %v622_v11 }
 0x11d   :  { %v634_v18 = vpop.eup %633  ;;  %v456_v19 = vmul.f32 %v632_v16, %v624_v12 }
 0x11e   :  { %v636_v20 = vpop.eup %635  ;;  %462 = vst [vmem:[%s829_s4] sm:$0xff] %v454_v17  ;;  %v455_v21 = vmul.f32 %v634_v18, %v626_v13 }
 0x11f   :  { %464 = vst [vmem:[%s829_s4 + $0x10] sm:$0xff] %v456_v19  ;;  %v457_v22 = vmul.f32 %v636_v20, %v628_v14 }
 0x120   :  { %463 = vst [vmem:[%s829_s4 + $0x8] sm:$0xff] %v455_v21 }
 0x121   :  { %465 = vst [vmem:[%s829_s4 + $0x18] sm:$0xff] %v457_v22 }

</bundles_post_ra>
